<compile_context>
chip_gen: v6e
topology: v6e:2x2x1
jax: 0.10.0
libtpu: 0.0.40
codegen_flags: <defaults>
</compile_context>

<pallas_src>
import jax
import jax.numpy as jnp
from jax.experimental import pallas as pl
from jax.experimental.pallas import tpu as pltpu


def _round_up(x, m):
    return ((x + m - 1) // m) * m


def _mlp_kernel(x_ref, w1_ref, b1_ref, w2_ref, b2_ref, o_ref):
    # x_ref:  (TM, Din) f32   w1_ref: (Din, H) bf16   b1_ref: (1, H) f32
    # w2_ref: (H, Dout) bf16  b2_ref: (1, Dout) f32   o_ref:  (TM, Dout) f32
    x = x_ref[...].astype(w1_ref.dtype)              # in-kernel f32 -> bf16 cast
    h = jnp.dot(x, w1_ref[...], preferred_element_type=jnp.float32)
    h = jnp.maximum(h + b1_ref[...], 0.0)            # f32 bias + ReLU on the VPU
    h = h.astype(w2_ref.dtype)                       # back to MXU input dtype
    # TODO(synk): for d_out <= 8 do this layer on the VPU/XLU to avoid N-padding.
    o = jnp.dot(h, w2_ref[...], preferred_element_type=jnp.float32) + b2_ref[...]
    o_ref[...] = o.astype(o_ref.dtype)


def _vmem_budgets():
    """Returns (budget for tile sizing, cap for vmem_limit_bytes) per chip gen."""
    try:
        cap = int(getattr(pltpu.get_tpu_info(), "vmem_capacity_bytes",
                          64 * 1024 * 1024))
    except Exception:
        cap = 64 * 1024 * 1024                       # conservative (v7x-sized)
    if cap <= 64 * 1024 * 1024:                      # v7x: 64 MiB per TensorCore
        return 40 * 1024 * 1024, 48 * 1024 * 1024
    return 80 * 1024 * 1024, 100 * 1024 * 1024       # v5e / v6e: 128 MiB


def projection_head_forward(x, w1, b1, w2, b2, *, tile_m=512,
                            compute_dtype=jnp.bfloat16,
                            vmem_budget_bytes=None):
    """Fused forward: Linear2(relu(Linear1(x))).squeeze(-1).

    x:  (N, Din) float32
    w1: (Din, H)   b1: (1, H)      (weights pre-transposed vs. torch layout)
    w2: (H, Dout)  b2: (1, Dout)
    """
    n, d_in = x.shape
    hidden = w1.shape[1]
    d_out = w2.shape[1]
    out_dtype = x.dtype

    csize = jnp.dtype(compute_dtype).itemsize
    row_align = 8                                    # x / out blocks are f32 at HBM

    budget, limit_cap = _vmem_budgets()
    if vmem_budget_bytes is not None:
        budget = vmem_budget_bytes

    # Weights/biases are cast once in the wrapper (one-time, then VMEM-resident);
    # x stays f32 and is cast per-tile inside the kernel, avoiding an extra full
    # HBM read+write pass over the activations.
    w1c = w1.astype(compute_dtype)
    w2c = w2.astype(compute_dtype)
    b1f = b1.astype(jnp.float32)
    b2f = b2.astype(jnp.float32)

    # Row tile: large, 8-aligned, no bigger than the (8-rounded) batch.
    tile_m = min(_round_up(max(tile_m, row_align), row_align),
                 _round_up(n, row_align))
    # >= 2 grid steps when the batch allows it, so the "parallel" M axis can use
    # both TensorCores on v7x (one extra step is only ~0.35 us elsewhere).
    if n > row_align and tile_m >= n:
        tile_m = min(tile_m, _round_up((n + 1) // 2, row_align))

    # Resident weights are single-buffered (constant index_map); x/out tiles are
    # double-buffered by the pipeline.  Also count the in-kernel bf16 copies.
    w_bytes = ((d_in * hidden + hidden * d_out) * csize
               + (hidden + d_out) * 4)

    def footprint(tm):
        return (2 * tm * d_in * 4            # x tile (f32), double-buffered
                + tm * d_in * csize          # bf16 copy of the x tile
                + tm * hidden * 4            # f32 hidden intermediate
                + tm * hidden * csize        # bf16 copy of h
                + 2 * tm * d_out * 4         # out tile (f32), double-buffered
                + w_bytes)                   # resident weights / biases

    while tile_m > row_align and footprint(tile_m) > budget:
        tile_m = max(row_align, _round_up(tile_m // 2, row_align))
    # TODO(synk): if w_bytes alone exceeds `budget` (huge in_feats) this bottoms
    # out at tile_m=8; the K-tiling path above is required for those sizes.

    fp = footprint(tile_m)
    # Always set an explicit limit (v5e defaults to 16 MiB scoped VMEM), with
    # headroom for compiler-internal scratch, capped per generation.
    vmem_limit = min(max(fp + 8 * 1024 * 1024, 16 * 1024 * 1024), limit_cap)

    grid = (pl.cdiv(n, tile_m),)

    cost = pl.CostEstimate(
        flops=2 * n * (d_in * hidden + hidden * d_out),
        transcendentals=0,
        bytes_accessed=(n * d_in * 4 + n * d_out * 4
                        + (d_in * hidden + hidden * d_out) * csize
                        + (hidden + d_out) * 4))

    def build(single_buffer_weights):
        def resident(shape):
            if single_buffer_weights:
                return pl.BlockSpec(shape, lambda i: (0, 0),
                                    pipeline_mode=pl.Buffered(1))
            return pl.BlockSpec(shape, lambda i: (0, 0))

        return pl.pallas_call(
            _mlp_kernel,
            out_shape=jax.ShapeDtypeStruct((n, d_out), out_dtype),
            grid_spec=pltpu.PrefetchScalarGridSpec(
                num_scalar_prefetch=0,
                grid=grid,
                in_specs=[
                    pl.BlockSpec((tile_m, d_in), lambda i: (i, 0)),  # x tile
                    resident((d_in, hidden)),                        # W1 (resident)
                    resident((1, hidden)),                           # b1
                    resident((hidden, d_out)),                       # W2 (resident)
                    resident((1, d_out)),                            # b2
                ],
                out_specs=pl.BlockSpec((tile_m, d_out), lambda i: (i, 0)),
            ),
            compiler_params=pltpu.CompilerParams(
                dimension_semantics=("parallel",),
                vmem_limit_bytes=vmem_limit),
            cost_estimate=cost,
        )

    try:
        out = build(True)(x, w1c, b1f, w2c, b2f)
    except Exception:
        # Fallback for JAX builds without BlockSpec(pipeline_mode=...) support:
        # identical kernel with default (double-buffered) resident weights.
        out = build(False)(x, w1c, b1f, w2c, b2f)

    # torch's .squeeze(-1): only squeezes if the last dim is size 1.
    if d_out == 1:
        out = jnp.squeeze(out, axis=-1)
    return out


def _xavier_uniform(key, shape, gain):
    # shape is the PyTorch Linear weight shape: (fan_out, fan_in)
    fan_out, fan_in = shape
    limit = gain * jnp.sqrt(6.0 / (fan_in + fan_out))
    return jax.random.uniform(key, shape, jnp.float32, -limit, limit)


def make_projection_head_params(key, in_feats, out_feats):
    """Params matching Projection_Head.__init__: xavier_uniform weights with
    relu gain; PyTorch-default uniform(+-1/sqrt(fan_in)) biases."""
    hidden_feats = int(in_feats / 2)
    gain = float(jnp.sqrt(2.0))  # nn.init.calculate_gain('relu')
    k1, k2, k3, k4 = jax.random.split(key, 4)
    w1_pt = _xavier_uniform(k1, (hidden_feats, in_feats), gain)   # torch (out, in)
    w2_pt = _xavier_uniform(k2, (out_feats, hidden_feats), gain)
    b1 = jax.random.uniform(k3, (1, hidden_feats), jnp.float32,
                            -1.0 / jnp.sqrt(in_feats), 1.0 / jnp.sqrt(in_feats))
    b2 = jax.random.uniform(k4, (1, out_feats), jnp.float32,
                            -1.0 / jnp.sqrt(hidden_feats), 1.0 / jnp.sqrt(hidden_feats))
    # Store transposed for row-major (M, K) x (K, N) matmuls in the kernel.
    return w1_pt.T, b1, w2_pt.T, b2


if __name__ == "__main__":
    key = jax.random.PRNGKey(0)
    batch, in_feats, out_feats = 16, 32, 8
    kx, kp = jax.random.split(key)

    x = jax.random.normal(kx, (batch, in_feats), jnp.float32)
    w1, b1, w2, b2 = make_projection_head_params(kp, in_feats, out_feats)

    out = projection_head_forward(x, w1, b1, w2, b2)
    out = jax.block_until_ready(out)

    # Pure-JAX reference with matching bf16-input / f32-accumulate matmuls.
    bf16 = jnp.bfloat16
    h_ref = jnp.maximum(
        jnp.dot(x.astype(bf16), w1.astype(bf16),
                preferred_element_type=jnp.float32) + b1, 0.0)
    ref = jnp.dot(h_ref.astype(bf16), w2.astype(bf16),
                  preferred_element_type=jnp.float32) + b2
    assert out.shape == (batch, out_feats)
    assert jnp.allclose(out, ref, atol=1e-2, rtol=1e-2), \
        float(jnp.max(jnp.abs(out - ref)))

    # Exercise the d_out == 1 squeeze(-1) path as well.
    w1s, b1s, w2s, b2s = make_projection_head_params(kp, in_feats, 1)
    out1 = jax.block_until_ready(projection_head_forward(x, w1s, b1s, w2s, b2s))
    assert out1.shape == (batch,)

    print("KERNEL_OK")
</pallas_src>

<mosaic_0001>
module attributes {stable_mosaic.version = 11 : i64} {
  func.func @_mlp_kernel(%arg0: i32, %arg1: memref<8x32xf32, #tpu.memory_space<vmem>>, %arg2: memref<32x16xbf16, #tpu.memory_space<vmem>>, %arg3: memref<1x16xf32, #tpu.memory_space<vmem>>, %arg4: memref<16x8xbf16, #tpu.memory_space<vmem>>, %arg5: memref<1x8xf32, #tpu.memory_space<vmem>>, %arg6: memref<8x8xf32, #tpu.memory_space<vmem>>) attributes {dimension_semantics = [#tpu.dimension_semantics<parallel>], iteration_bounds = array<i64: 2>, scalar_prefetch = 0 : i64, scratch_operands = 0 : i64, tpu.core_type = #tpu.core_type<tc>, window_params = [{transform_indices = @transform_0, window_bounds = array<i64: 8, 32>}, {pipeline_mode = #tpu.pipeline_mode<synchronous>, transform_indices = @transform_1, window_bounds = array<i64: 32, 16>}, {pipeline_mode = #tpu.pipeline_mode<synchronous>, transform_indices = @transform_2, window_bounds = array<i64: 1, 16>}, {pipeline_mode = #tpu.pipeline_mode<synchronous>, transform_indices = @transform_3, window_bounds = array<i64: 16, 8>}, {pipeline_mode = #tpu.pipeline_mode<synchronous>, transform_indices = @transform_4, window_bounds = array<i64: 1, 8>}, {transform_indices = @transform_5, window_bounds = array<i64: 8, 8>}]} {
    %c0 = arith.constant 0 : index
    %c0_0 = arith.constant 0 : index
    %0 = vector.load %arg1[%c0, %c0_0] : memref<8x32xf32, #tpu.memory_space<vmem>>, vector<8x32xf32>
    %1 = arith.truncf %0 : vector<8x32xf32> to vector<8x32xbf16>
    %c0_1 = arith.constant 0 : index
    %c0_2 = arith.constant 0 : index
    %2 = vector.load %arg2[%c0_1, %c0_2] : memref<32x16xbf16, #tpu.memory_space<vmem>>, vector<32x16xbf16>
    %cst = arith.constant dense<0.000000e+00> : vector<8x16xf32>
    %3 = tpu.matmul %1, %2, %cst {dimension_numbers = #tpu.dot_dimension_numbers<[1], [0], [0], [1], [0, 0, 1, 1], [], []>} : vector<8x32xbf16>, vector<32x16xbf16>, vector<8x16xf32> -> vector<8x16xf32>
    %c0_3 = arith.constant 0 : index
    %c0_4 = arith.constant 0 : index
    %4 = vector.load %arg3[%c0_3, %c0_4] : memref<1x16xf32, #tpu.memory_space<vmem>>, vector<1x16xf32>
    %5 = vector.broadcast %4 : vector<1x16xf32> to vector<8x16xf32>
    %6 = arith.addf %3, %5 : vector<8x16xf32>
    %cst_5 = arith.constant 0.000000e+00 : f32
    %7 = vector.broadcast %cst_5 : f32 to vector<8x16xf32>
    %8 = arith.maximumf %6, %7 : vector<8x16xf32>
    %9 = arith.truncf %8 : vector<8x16xf32> to vector<8x16xbf16>
    %c0_6 = arith.constant 0 : index
    %c0_7 = arith.constant 0 : index
    %10 = vector.load %arg4[%c0_6, %c0_7] : memref<16x8xbf16, #tpu.memory_space<vmem>>, vector<16x8xbf16>
    %cst_8 = arith.constant dense<0.000000e+00> : vector<8x8xf32>
    %11 = tpu.matmul %9, %10, %cst_8 {dimension_numbers = #tpu.dot_dimension_numbers<[1], [0], [0], [1], [0, 0, 1, 1], [], []>} : vector<8x16xbf16>, vector<16x8xbf16>, vector<8x8xf32> -> vector<8x8xf32>
    %c0_9 = arith.constant 0 : index
    %c0_10 = arith.constant 0 : index
    %12 = vector.load %arg5[%c0_9, %c0_10] : memref<1x8xf32, #tpu.memory_space<vmem>>, vector<1x8xf32>
    %13 = vector.broadcast %12 : vector<1x8xf32> to vector<8x8xf32>
    %14 = arith.addf %11, %13 : vector<8x8xf32>
    %c0_11 = arith.constant 0 : index
    %c0_12 = arith.constant 0 : index
    %15 = vector.load %arg6[%c0_11, %c0_12] : memref<8x8xf32, #tpu.memory_space<vmem>>, vector<8x8xf32>
    tpu.vector_store %arg6[%c0_11, %c0_12], %14 {strides = array<i32>} : memref<8x8xf32, #tpu.memory_space<vmem>>, vector<8x8xf32>,
    return
  }
  func.func @transform_0(%arg0: i32) -> (i32, i32) {
    %c0_i32 = arith.constant 0 : i32
    %c0_i32_0 = arith.constant 0 : i32
    return %arg0, %c0_i32 : i32, i32
  }
  func.func @transform_1(%arg0: i32) -> (i32, i32) {
    %c0_i32 = arith.constant 0 : i32
    %c0_i32_0 = arith.constant 0 : i32
    %c0_i32_1 = arith.constant 0 : i32
    return %c0_i32, %c0_i32_0 : i32, i32
  }
  func.func @transform_2(%arg0: i32) -> (i32, i32) {
    %c0_i32 = arith.constant 0 : i32
    %c0_i32_0 = arith.constant 0 : i32
    %c0_i32_1 = arith.constant 0 : i32
    return %c0_i32, %c0_i32_0 : i32, i32
  }
  func.func @transform_3(%arg0: i32) -> (i32, i32) {
    %c0_i32 = arith.constant 0 : i32
    %c0_i32_0 = arith.constant 0 : i32
    %c0_i32_1 = arith.constant 0 : i32
    return %c0_i32, %c0_i32_0 : i32, i32
  }
  func.func @transform_4(%arg0: i32) -> (i32, i32) {
    %c0_i32 = arith.constant 0 : i32
    %c0_i32_0 = arith.constant 0 : i32
    %c0_i32_1 = arith.constant 0 : i32
    return %c0_i32, %c0_i32_0 : i32, i32
  }
  func.func @transform_5(%arg0: i32) -> (i32, i32) {
    %c0_i32 = arith.constant 0 : i32
    %c0_i32_0 = arith.constant 0 : i32
    return %arg0, %c0_i32 : i32, i32
  }
}

module attributes {stable_mosaic.version = 11 : i64} {
  func.func @_mlp_kernel(%arg0: i32, %arg1: memref<8x32xf32, #tpu.memory_space<vmem>>, %arg2: memref<32x16xbf16, #tpu.memory_space<vmem>>, %arg3: memref<1x16xf32, #tpu.memory_space<vmem>>, %arg4: memref<16x8xbf16, #tpu.memory_space<vmem>>, %arg5: memref<1x8xf32, #tpu.memory_space<vmem>>, %arg6: memref<8x8xf32, #tpu.memory_space<vmem>>) attributes {dimension_semantics = [#tpu.dimension_semantics<parallel>], iteration_bounds = array<i64: 2>, scalar_prefetch = 0 : i64, scratch_operands = 0 : i64, tpu.core_type = #tpu.core_type<tc>, window_params = [{transform_indices = @transform_0, window_bounds = array<i64: 8, 32>}, {pipeline_mode = #tpu.pipeline_mode<synchronous>, transform_indices = @transform_1, window_bounds = array<i64: 32, 16>}, {pipeline_mode = #tpu.pipeline_mode<synchronous>, transform_indices = @transform_2, window_bounds = array<i64: 1, 16>}, {pipeline_mode = #tpu.pipeline_mode<synchronous>, transform_indices = @transform_3, window_bounds = array<i64: 16, 8>}, {pipeline_mode = #tpu.pipeline_mode<synchronous>, transform_indices = @transform_4, window_bounds = array<i64: 1, 8>}, {transform_indices = @transform_5, window_bounds = array<i64: 8, 8>}]} {
    %c0 = arith.constant 0 : index
    %c0_0 = arith.constant 0 : index
    %0 = vector.load %arg1[%c0, %c0_0] : memref<8x32xf32, #tpu.memory_space<vmem>>, vector<8x32xf32>
    %1 = arith.truncf %0 : vector<8x32xf32> to vector<8x32xbf16>
    %c0_1 = arith.constant 0 : index
    %c0_2 = arith.constant 0 : index
    %2 = vector.load %arg2[%c0_1, %c0_2] : memref<32x16xbf16, #tpu.memory_space<vmem>>, vector<32x16xbf16>
    %cst = arith.constant dense<0.000000e+00> : vector<8x16xf32>
    %3 = tpu.matmul %1, %2, %cst {dimension_numbers = #tpu.dot_dimension_numbers<[1], [0], [0], [1], [0, 0, 1, 1], [], []>} : vector<8x32xbf16>, vector<32x16xbf16>, vector<8x16xf32> -> vector<8x16xf32>
    %c0_3 = arith.constant 0 : index
    %c0_4 = arith.constant 0 : index
    %4 = vector.load %arg3[%c0_3, %c0_4] : memref<1x16xf32, #tpu.memory_space<vmem>>, vector<1x16xf32>
    %5 = vector.broadcast %4 : vector<1x16xf32> to vector<8x16xf32>
    %6 = arith.addf %3, %5 : vector<8x16xf32>
    %cst_5 = arith.constant 0.000000e+00 : f32
    %7 = vector.broadcast %cst_5 : f32 to vector<8x16xf32>
    %8 = arith.maximumf %6, %7 : vector<8x16xf32>
    %9 = arith.truncf %8 : vector<8x16xf32> to vector<8x16xbf16>
    %c0_6 = arith.constant 0 : index
    %c0_7 = arith.constant 0 : index
    %10 = vector.load %arg4[%c0_6, %c0_7] : memref<16x8xbf16, #tpu.memory_space<vmem>>, vector<16x8xbf16>
    %cst_8 = arith.constant dense<0.000000e+00> : vector<8x8xf32>
    %11 = tpu.matmul %9, %10, %cst_8 {dimension_numbers = #tpu.dot_dimension_numbers<[1], [0], [0], [1], [0, 0, 1, 1], [], []>} : vector<8x16xbf16>, vector<16x8xbf16>, vector<8x8xf32> -> vector<8x8xf32>
    %c0_9 = arith.constant 0 : index
    %c0_10 = arith.constant 0 : index
    %12 = vector.load %arg5[%c0_9, %c0_10] : memref<1x8xf32, #tpu.memory_space<vmem>>, vector<1x8xf32>
    %13 = vector.broadcast %12 : vector<1x8xf32> to vector<8x8xf32>
    %14 = arith.addf %11, %13 : vector<8x8xf32>
    %c0_11 = arith.constant 0 : index
    %c0_12 = arith.constant 0 : index
    %15 = vector.load %arg6[%c0_11, %c0_12] : memref<8x8xf32, #tpu.memory_space<vmem>>, vector<8x8xf32>
    tpu.vector_store %arg6[%c0_11, %c0_12], %14 {strides = array<i32>} : memref<8x8xf32, #tpu.memory_space<vmem>>, vector<8x8xf32>,
    return
  }
  func.func @transform_0(%arg0: i32) -> (i32, i32) {
    %c0_i32 = arith.constant 0 : i32
    %c0_i32_0 = arith.constant 0 : i32
    return %arg0, %c0_i32 : i32, i32
  }
  func.func @transform_1(%arg0: i32) -> (i32, i32) {
    %c0_i32 = arith.constant 0 : i32
    %c0_i32_0 = arith.constant 0 : i32
    %c0_i32_1 = arith.constant 0 : i32
    return %c0_i32, %c0_i32_0 : i32, i32
  }
  func.func @transform_2(%arg0: i32) -> (i32, i32) {
    %c0_i32 = arith.constant 0 : i32
    %c0_i32_0 = arith.constant 0 : i32
    %c0_i32_1 = arith.constant 0 : i32
    return %c0_i32, %c0_i32_0 : i32, i32
  }
  func.func @transform_3(%arg0: i32) -> (i32, i32) {
    %c0_i32 = arith.constant 0 : i32
    %c0_i32_0 = arith.constant 0 : i32
    %c0_i32_1 = arith.constant 0 : i32
    return %c0_i32, %c0_i32_0 : i32, i32
  }
  func.func @transform_4(%arg0: i32) -> (i32, i32) {
    %c0_i32 = arith.constant 0 : i32
    %c0_i32_0 = arith.constant 0 : i32
    %c0_i32_1 = arith.constant 0 : i32
    return %c0_i32, %c0_i32_0 : i32, i32
  }
  func.func @transform_5(%arg0: i32) -> (i32, i32) {
    %c0_i32 = arith.constant 0 : i32
    %c0_i32_0 = arith.constant 0 : i32
    return %arg0, %c0_i32 : i32, i32
  }
}

</mosaic_0001>

<bundles_post_ra>
// kernel: tpu_custom_call.1
= control target key start
LH: loop header
LB: loop body
LE: loop exit
PB: predicated region body
PF: predicated region fallthrough
CT: control target
= control target key end

     0   :  { %s494_s18 = smov 0   ;;  %s526_s0 = inlined_call_operand.vmem [shape: f32[16,32], index: 0, kind: input, shape index: {}]   ;;  %s527_s1 = inlined_call_operand.vmem [shape: bf16[32,16], index: 1, kind: input, shape index: {}]   ;;  %s528_s2 = inlined_call_operand.vmem [shape: f32[1,16], index: 2, kind: input, shape index: {}]   ;;  %s529_s3 = inlined_call_operand.vmem [shape: bf16[16,8], index: 3, kind: input, shape index: {}]   ;;  %s530_s4 = inlined_call_operand.vmem [shape: f32[1,8], index: 4, kind: input, shape index: {}]   ;;  %s531_s5 = inlined_call_operand.vmem [shape: f32[16,8], index: 5, kind: output, shape index: {}]  }
   0x1 LB: > { %s406_s19 = sadd.s32 4294967295, %s460_s18   ;;  %p410_p0 = scmp.ge.s32.totalorder %s460_s18, 1  ;;  %s460_s18 = sphi %s494_s18, %s15_s18  }
   0x2   : > { %p186_p1 = scmp.lt.s32.totalorder %s460_s18, 3 }
   0x4   : > { %p187_p2 = pnand %p410_p0, %p186_p1 }
   0x5   : > { %p212_p3 = scmp.lt.s32.totalorder (!%p187_p2), %s406_s19, 1 }
   0x6   : > { %190 = sbr.rel (%p187_p2) target bundleno = 418 (0x1a2), region = 40 }
   0xb   : > { %v451_v0 = vld [vmem:[%s527_s1 + $0x8] sm:$0xff]   ;;  %v462_v1 = vmov 0.0   ;;  %v452_v2 = vld [vmem:[%s527_s1] sm:$0xff]   ;;  %vm463_vm0 = vmmov 0   ;;  %s533_s19 = smov (!%p212_p3, %s406_s19), 1  ;;  %vm246_vm1 = vcmask 261120  }
   0xc   : > { %427 = vmatprep.subr.bf16.mxu0 %v462_v1  ;;  %435 = vmatprep.subr.bf16.mxu1 %v462_v1  ;;  %s411_s24 = sshll.u32 %s533_s19, 3  ;;  %v453_v5 = vld [vmem:[%s529_s3] sm:$0xff]   ;;  %vm307_vm2 = vcmask 130048   ;;  %vm351_vm3 = vcmask 64512  }
   0xd   : > { %428 = vmatpush3.bf16.msra.mxu0 %v451_v0  ;;  %431 = vmatprep.mubr.msk.bf16.mxu0 %vm463_vm0, %v462_v1  ;;  %s215_s27 = scalar_lea.vmem %s526_s0, %s411_s24  ;;  %v413_v6 = vld [vmem:[%s528_s2] ss:$0 sm:$0xff]  ;;  %s219_s11 = scalar_lea.vmem %s531_s5, %s411_s24 }
   0xe   : > { %429 = vmatprep.subr.bf16.mxu0 %v462_v1  ;;  %437 = vmatprep.mubr.msk.bf16.mxu1 %vm463_vm0, %v462_v1  ;;  %v221_v3 = vld [vmem:[%s215_s27] sm:$0xff] }
   0xf   : > { %v222_v4 = vpack.c.bf16 %v221_v3, %v221_v3  ;;  %436 = vmatpush3.bf16.msra.mxu1 %v453_v5  ;;  %v417_v14 = vld [vmem:[%s530_s4] ss:$0 sm:$0xff] }
  0x11   : > { %430 = vmatpush3.bf16.msra.mxu0 %v452_v2 }
  0x14   : > { %432 = vmatmul.mubr.msk.bf16.vlgmr.msra.gmra.mxu0 %vm246_vm1, %v222_v4 }
  0xd4   : > { %v284_v7 = vpop.f32.mrf.mxu0 }
  0xd5   : > { %v285_v8 = vadd.f32 %v413_v6, %v284_v7 }
  0xd6   : > { %v433_v9 = vpop.f32.mrf.mxu0 }
  0xd7   : > { %v290_v10 = vmax.f32 %v285_v8, 0.0 }
  0xd8   : > { %v287_v11 = vpop.f32.mrf.mxu0 }
  0xd9   : > { %v291_v12 = vpack.c.bf16 %v290_v10, %v290_v10 }
  0xda   : > { %v434_v13 = vpop.f32.mrf.mxu0 }
  0xdb   : > { %438 = vmatmul.mubr.msk.bf16.vlgmr.msra.gmra.mxu1 %vm307_vm2, %v291_v12 }
 0x19b   : > { %v345_v15 = vpop.f32.mrf.mxu1 }
 0x19c   : > { %v346_v16 = vadd.f32 %v417_v14, %v345_v15 }
 0x19d   : > { %v439_v17 = vpop.f32.mrf.mxu1 }
 0x19e   : > { %352 = vst.msk [vmem:[%s219_s11] sm:$0xff] %vm351_vm3, %v346_v16 }
 0x19f   : > { %v348_v18 = vpop.f32.mrf.mxu1 }
 0x1a1   : > { %v440_v19 = vpop.f32.mrf.mxu1 }
 0x1a2 PF: > { %s15_s18 = sadd.s32 1, %s460_s18  }
 0x1a3   : > { %p12_p4 = scmp.ge.s32.totalorder %s15_s18, 4  }
 0x1a5   :  { %14 = sbr.rel (!%p12_p4) target bundleno = 1 (0x1), region = 70 }

// kernel: tpu_custom_call.1
= control target key start
LH: loop header
LB: loop body
LE: loop exit
PB: predicated region body
PF: predicated region fallthrough
CT: control target
= control target key end

     0   :  { %s494_s18 = smov 0   ;;  %s526_s0 = inlined_call_operand.vmem [shape: f32[16,32], index: 0, kind: input, shape index: {}]   ;;  %s527_s1 = inlined_call_operand.vmem [shape: bf16[32,16], index: 1, kind: input, shape index: {}]   ;;  %s528_s2 = inlined_call_operand.vmem [shape: f32[1,16], index: 2, kind: input, shape index: {}]   ;;  %s529_s3 = inlined_call_operand.vmem [shape: bf16[16,8], index: 3, kind: input, shape index: {}]   ;;  %s530_s4 = inlined_call_operand.vmem [shape: f32[1,8], index: 4, kind: input, shape index: {}]   ;;  %s531_s5 = inlined_call_operand.vmem [shape: f32[16,8], index: 5, kind: output, shape index: {}]  }
   0x1 LB: > { %s406_s19 = sadd.s32 4294967295, %s460_s18   ;;  %p410_p0 = scmp.ge.s32.totalorder %s460_s18, 1  ;;  %s460_s18 = sphi %s494_s18, %s15_s18  }
   0x2   : > { %p186_p1 = scmp.lt.s32.totalorder %s460_s18, 3 }
   0x4   : > { %p187_p2 = pnand %p410_p0, %p186_p1 }
   0x5   : > { %p212_p3 = scmp.lt.s32.totalorder (!%p187_p2), %s406_s19, 1 }
   0x6   : > { %190 = sbr.rel (%p187_p2) target bundleno = 418 (0x1a2), region = 40 }
   0xb   : > { %v451_v0 = vld [vmem:[%s527_s1 + $0x8] sm:$0xff]   ;;  %v462_v1 = vmov 0.0   ;;  %v452_v2 = vld [vmem:[%s527_s1] sm:$0xff]   ;;  %vm463_vm0 = vmmov 0   ;;  %s533_s19 = smov (!%p212_p3, %s406_s19), 1  ;;  %vm246_vm1 = vcmask 261120  }
   0xc   : > { %427 = vmatprep.subr.bf16.mxu0 %v462_v1  ;;  %435 = vmatprep.subr.bf16.mxu1 %v462_v1  ;;  %s411_s24 = sshll.u32 %s533_s19, 3  ;;  %v453_v5 = vld [vmem:[%s529_s3] sm:$0xff]   ;;  %vm307_vm2 = vcmask 130048   ;;  %vm351_vm3 = vcmask 64512  }
   0xd   : > { %428 = vmatpush3.bf16.msra.mxu0 %v451_v0  ;;  %431 = vmatprep.mubr.msk.bf16.mxu0 %vm463_vm0, %v462_v1  ;;  %s215_s27 = scalar_lea.vmem %s526_s0, %s411_s24  ;;  %v413_v6 = vld [vmem:[%s528_s2] ss:$0 sm:$0xff]  ;;  %s219_s11 = scalar_lea.vmem %s531_s5, %s411_s24 }
   0xe   : > { %429 = vmatprep.subr.bf16.mxu0 %v462_v1  ;;  %437 = vmatprep.mubr.msk.bf16.mxu1 %vm463_vm0, %v462_v1  ;;  %v221_v3 = vld [vmem:[%s215_s27] sm:$0xff] }
   0xf   : > { %v222_v4 = vpack.c.bf16 %v221_v3, %v221_v3  ;;  %436 = vmatpush3.bf16.msra.mxu1 %v453_v5  ;;  %v417_v14 = vld [vmem:[%s530_s4] ss:$0 sm:$0xff] }
  0x11   : > { %430 = vmatpush3.bf16.msra.mxu0 %v452_v2 }
  0x14   : > { %432 = vmatmul.mubr.msk.bf16.vlgmr.msra.gmra.mxu0 %vm246_vm1, %v222_v4 }
  0xd4   : > { %v284_v7 = vpop.f32.mrf.mxu0 }
  0xd5   : > { %v285_v8 = vadd.f32 %v413_v6, %v284_v7 }
  0xd6   : > { %v433_v9 = vpop.f32.mrf.mxu0 }
  0xd7   : > { %v290_v10 = vmax.f32 %v285_v8, 0.0 }
  0xd8   : > { %v287_v11 = vpop.f32.mrf.mxu0 }
  0xd9   : > { %v291_v12 = vpack.c.bf16 %v290_v10, %v290_v10 }
  0xda   : > { %v434_v13 = vpop.f32.mrf.mxu0 }
  0xdb   : > { %438 = vmatmul.mubr.msk.bf16.vlgmr.msra.gmra.mxu1 %vm307_vm2, %v291_v12 }
 0x19b   : > { %v345_v15 = vpop.f32.mrf.mxu1 }
 0x19c   : > { %v346_v16 = vadd.f32 %v417_v14, %v345_v15 }
 0x19d   : > { %v439_v17 = vpop.f32.mrf.mxu1 }
 0x19e   : > { %352 = vst.msk [vmem:[%s219_s11] sm:$0xff] %vm351_vm3, %v346_v16 }
 0x19f   : > { %v348_v18 = vpop.f32.mrf.mxu1 }
 0x1a1   : > { %v440_v19 = vpop.f32.mrf.mxu1 }
 0x1a2 PF: > { %s15_s18 = sadd.s32 1, %s460_s18  }
 0x1a3   : > { %p12_p4 = scmp.ge.s32.totalorder %s15_s18, 4  }
 0x1a5   :  { %14 = sbr.rel (!%p12_p4) target bundleno = 1 (0x1), region = 70 }

</bundles_post_ra>
